<compile_context>
chip_gen: v6e
topology: v6e:2x2x1
jax: 0.10.0
libtpu: 0.0.40
codegen_flags: <defaults>
</compile_context>

<pallas_src>
import math

import jax
import jax.numpy as jnp
from jax import lax
from jax.experimental import pallas as pl
from jax.experimental.pallas import tpu as pltpu

LANES = 128   # vreg lane width
TM = 4096     # rows per tile: 4096 * 128 * 4 B = 2 MiB per input per block
CHUNK = 64    # rows per inner fori_loop chunk (8 f32 vregs per temporary)


def _num_tensorcores() -> int:
    """2 on dual-TensorCore chips (v7x); 1 on v5e / v6e."""
    try:
        kind = jax.devices()[0].device_kind.lower()
    except Exception:
        return 1
    return 2 if "v7" in kind else 1


def _make_kernel(tm, chunk, tiles_per_core, num_tiles, needs_gate):
    """Kernel accumulating per-core partial sums of (d^2, exp(-d^2/162), |d|+log1p(exp(-2|d|)))."""
    n_chunks = tm // chunk
    unroll = max(1, min(4, n_chunks))

    def fold8(x):
        # (chunk, 128) -> (8, 128) using only aligned-slab VALU adds.
        acc = x[0:8, :]
        for j in range(1, chunk // 8):
            acc = acc + x[8 * j:8 * (j + 1), :]
        return acc

    def kernel(p_ref, y_ref, out_ref):
        i = pl.program_id(1)

        @pl.when(i == 0)
        def _init():
            out_ref[...] = jnp.zeros_like(out_ref)

        def _accumulate():
            def body(j, carry):
                sq_acc, exp_acc, lc_acc = carry
                off = pl.multiple_of(j * chunk, chunk)
                pr = p_ref[pl.ds(off, chunk), :].astype(jnp.float32)
                yr = y_ref[pl.ds(off, chunk), :].astype(jnp.float32)
                d = pr - yr
                sq = d * d
                e = jnp.exp(sq * (-1.0 / 162.0))          # bell affine hoisted
                ad = jnp.abs(d)
                lc = ad + jnp.log1p(jnp.exp(-2.0 * ad))   # log(cosh d) + log 2
                return (sq_acc + fold8(sq),
                        exp_acc + fold8(e),
                        lc_acc + fold8(lc))

            z = jnp.zeros((8, LANES), jnp.float32)
            sq_acc, exp_acc, lc_acc = lax.fori_loop(
                0, n_chunks, body, (z, z, z), unroll=unroll)

            out_ref[0, 0] = out_ref[0, 0] + sq_acc
            out_ref[0, 1] = out_ref[0, 1] + exp_acc
            out_ref[0, 2] = out_ref[0, 2] + lc_acc

        if needs_gate:
            t = pl.program_id(0) * tiles_per_core + i
            pl.when(t < num_tiles)(_accumulate)
        else:
            _accumulate()

    return kernel


def _tail_sums(p, y):
    """Plain-JAX partial sums for the ragged tail (< one tile)."""
    d = p.astype(jnp.float32) - y.astype(jnp.float32)
    sq = d * d
    e = jnp.exp(sq * (-1.0 / 162.0))
    ad = jnp.abs(d)
    lc = ad + jnp.log1p(jnp.exp(-2.0 * ad))
    return jnp.stack([jnp.sum(sq), jnp.sum(e), jnp.sum(lc)])


def _input_spec(tm, index_map, deep_pipeline):
    if deep_pipeline:
        try:
            return pl.BlockSpec((tm, LANES), index_map, pipeline_mode=pl.Buffered(3))
        except TypeError:
            pass
    return pl.BlockSpec((tm, LANES), index_map)


@jax.jit
def rm_bell_lcosh_loss(p: jax.Array, y: jax.Array) -> jax.Array:
    assert p.shape == y.shape
    n = p.size

    pf = p.reshape(-1)
    yf = y.reshape(-1)

    # --- tile geometry (static under jit) -------------------------------
    rows_full = n // LANES
    tm = TM if rows_full >= TM else (rows_full // 8) * 8
    num_tiles = rows_full // tm if tm > 0 else 0

    chunk = CHUNK
    while chunk > 8 and tm > 0 and tm % chunk != 0:
        chunk //= 2

    num_cores = max(1, min(_num_tensorcores(), num_tiles))
    tiles_per_core = -(-num_tiles // num_cores) if num_tiles else 0   # ceil
    needs_gate = num_cores * tiles_per_core != num_tiles
    n_main = num_tiles * tm * LANES

    if num_tiles > 0:
        # Tile-aligned prefix viewed as a lane-dense [rows, 128] slab (no pad).
        pm = pf[:n_main].reshape(num_tiles * tm, LANES)
        ym = yf[:n_main].reshape(num_tiles * tm, LANES)

        last = num_tiles - 1
        if needs_gate:
            def in_map(c, i, t=tiles_per_core, last=last):
                return (jnp.minimum(c * t + i, last), 0)
        else:
            def in_map(c, i, t=tiles_per_core):
                return (c * t + i, 0)

        itemsize = jnp.dtype(p.dtype).itemsize
        cost = pl.CostEstimate(flops=11 * n_main,
                               transcendentals=3 * n_main,
                               bytes_accessed=2 * n_main * itemsize)

        deep = num_cores == 2   # v7x only: 3-deep input pipelining
        partials = pl.pallas_call(
            _make_kernel(tm, chunk, tiles_per_core, num_tiles, needs_gate),
            out_shape=jax.ShapeDtypeStruct((num_cores, 3, 8, LANES), jnp.float32),
            grid=(num_cores, tiles_per_core),
            in_specs=[
                _input_spec(tm, in_map, deep),
                _input_spec(tm, in_map, deep),
            ],
            out_specs=pl.BlockSpec((1, 3, 8, LANES), lambda c, i: (c, 0, 0, 0)),
            compiler_params=pltpu.CompilerParams(
                dimension_semantics=("parallel", "arbitrary"),
                vmem_limit_bytes=32 * 1024 * 1024,
            ),
            cost_estimate=cost,
        )(pm, ym)
        sums = jnp.sum(partials, axis=(0, 2, 3))        # -> (3,)
    else:
        sums = jnp.zeros((3,), jnp.float32)

    # Ragged sub-tile tail in plain JAX (no padding / full-array copy).
    if n_main < n:
        sums = sums + _tail_sums(pf[n_main:], yf[n_main:])

    inv_n = 1.0 / n
    rmse = jnp.sqrt(sums[0] * inv_n)                     # sqrt(mean (p-y)^2)
    bell_mean = 300.0 * (1.0 - sums[1] * inv_n)          # hoisted bell affine
    logcosh_mean = sums[2] * inv_n - math.log(2.0)       # hoisted log(2)
    return rmse + bell_mean + logcosh_mean


def _reference(p, y):
    p = p.astype(jnp.float32)
    y = y.astype(jnp.float32)
    rmse = jnp.sqrt(jnp.mean((p - y) ** 2))
    bell = jnp.mean(300.0 * (1.0 - jnp.exp(-((y - p) ** 2) / 162.0)))
    logcosh = jnp.mean(jnp.log(jnp.cosh(p - y)))
    return rmse + bell + logcosh


if __name__ == "__main__":
    key = jax.random.PRNGKey(0)
    kp, ky = jax.random.split(key)
    shape = (2, 4, 16, 16)  # NCHW-shaped predictions / targets
    p = jax.random.normal(kp, shape, dtype=jnp.float32)
    y = jax.random.normal(ky, shape, dtype=jnp.float32)

    out = jax.block_until_ready(rm_bell_lcosh_loss(p, y))
    ref = jax.block_until_ready(_reference(p, y))
    assert jnp.allclose(out, ref, rtol=1e-5, atol=1e-5), (out, ref)
    print("KERNEL_OK")
</pallas_src>

<mosaic_0001>
module attributes {stable_mosaic.version = 11 : i64} {
  func.func @kernel(%arg0: i32, %arg1: i32, %arg2: memref<16x128xf32, #tpu.memory_space<vmem>>, %arg3: memref<16x128xf32, #tpu.memory_space<vmem>>, %arg4: memref<1x3x8x128xf32, #tpu.memory_space<vmem>>) attributes {dimension_semantics = [#tpu.dimension_semantics<parallel>, #tpu.dimension_semantics<arbitrary>], iteration_bounds = array<i64: 1, 1>, scalar_prefetch = 0 : i64, scratch_operands = 0 : i64, tpu.core_type = #tpu.core_type<tc>, window_params = [{transform_indices = @transform_0, window_bounds = array<i64: 16, 128>}, {transform_indices = @transform_1, window_bounds = array<i64: 16, 128>}, {transform_indices = @transform_2, window_bounds = array<i64: 1, 3, 8, 128>}]} {
    %c0_i32 = arith.constant 0 : i32
    %0 = arith.cmpi eq, %arg1, %c0_i32 : i32
    %1 = arith.extui %0 : i1 to i32
    %c0_i32_0 = arith.constant 0 : i32
    %2 = arith.cmpi ne, %1, %c0_i32_0 : i32
    scf.if %2 {
      %cst_27 = arith.constant 0.000000e+00 : f32
      %51 = vector.broadcast %cst_27 : f32 to vector<1x3x8x128xf32>
      %c0_28 = arith.constant 0 : index
      %c0_29 = arith.constant 0 : index
      %c0_30 = arith.constant 0 : index
      %c0_31 = arith.constant 0 : index
      %52 = vector.load %arg4[%c0_28, %c0_29, %c0_30, %c0_31] : memref<1x3x8x128xf32, #tpu.memory_space<vmem>>, vector<1x3x8x128xf32>
      tpu.vector_store %arg4[%c0_28, %c0_29, %c0_30, %c0_31], %51 {strides = array<i32>} : memref<1x3x8x128xf32, #tpu.memory_space<vmem>>, vector<1x3x8x128xf32>,
    } else {
    }
    %cst = arith.constant 0.000000e+00 : f32
    %3 = vector.broadcast %cst : f32 to vector<8x128xf32>
    %c0_i32_1 = arith.constant 0 : i32
    %c16_i32 = arith.constant 16 : i32
    %4 = arith.muli %c0_i32_1, %c16_i32 : i32
    %5 = tpu.assume_multiple %4, 16 : i32
    %6 = arith.index_cast %5 : i32 to index
    %c0 = arith.constant 0 : index
    %7 = vector.load %arg2[%6, %c0] : memref<16x128xf32, #tpu.memory_space<vmem>>, vector<16x128xf32>
    %8 = arith.index_cast %5 : i32 to index
    %c0_2 = arith.constant 0 : index
    %9 = vector.load %arg3[%8, %c0_2] : memref<16x128xf32, #tpu.memory_space<vmem>>, vector<16x128xf32>
    %10 = arith.subf %7, %9 : vector<16x128xf32>
    %11 = arith.mulf %10, %10 : vector<16x128xf32>
    %cst_3 = arith.constant -0.00617283955 : f32
    %12 = vector.broadcast %cst_3 : f32 to vector<16x128xf32>
    %13 = arith.mulf %11, %12 : vector<16x128xf32>
    %14 = math.exp %13 : vector<16x128xf32>
    %15 = math.absf %10 : vector<16x128xf32>
    %cst_4 = arith.constant -2.000000e+00 : f32
    %16 = vector.broadcast %cst_4 : f32 to vector<16x128xf32>
    %17 = arith.mulf %16, %15 : vector<16x128xf32>
    %18 = math.exp %17 : vector<16x128xf32>
    %19 = math.log1p %18 : vector<16x128xf32>
    %20 = arith.addf %15, %19 : vector<16x128xf32>
    %21 = vector.extract_strided_slice %11 {offsets = [0, 0], sizes = [8, 128], strides = [1, 1]} : vector<16x128xf32> to vector<8x128xf32>
    %22 = vector.extract_strided_slice %11 {offsets = [8, 0], sizes = [8, 128], strides = [1, 1]} : vector<16x128xf32> to vector<8x128xf32>
    %23 = arith.addf %21, %22 : vector<8x128xf32>
    %24 = arith.addf %3, %23 : vector<8x128xf32>
    %25 = vector.extract_strided_slice %14 {offsets = [0, 0], sizes = [8, 128], strides = [1, 1]} : vector<16x128xf32> to vector<8x128xf32>
    %26 = vector.extract_strided_slice %14 {offsets = [8, 0], sizes = [8, 128], strides = [1, 1]} : vector<16x128xf32> to vector<8x128xf32>
    %27 = arith.addf %25, %26 : vector<8x128xf32>
    %28 = arith.addf %3, %27 : vector<8x128xf32>
    %29 = vector.extract_strided_slice %20 {offsets = [0, 0], sizes = [8, 128], strides = [1, 1]} : vector<16x128xf32> to vector<8x128xf32>
    %30 = vector.extract_strided_slice %20 {offsets = [8, 0], sizes = [8, 128], strides = [1, 1]} : vector<16x128xf32> to vector<8x128xf32>
    %31 = arith.addf %29, %30 : vector<8x128xf32>
    %32 = arith.addf %3, %31 : vector<8x128xf32>
    %c1_i32 = arith.constant 1 : i32
    %c0_5 = arith.constant 0 : index
    %c0_6 = arith.constant 0 : index
    %c0_7 = arith.constant 0 : index
    %c0_8 = arith.constant 0 : index
    %33 = vector.load %arg4[%c0_5, %c0_6, %c0_7, %c0_8] : memref<1x3x8x128xf32, #tpu.memory_space<vmem>>, vector<1x1x8x128xf32>
    %34 = vector.shape_cast %33 : vector<1x1x8x128xf32> to vector<8x128xf32>
    %35 = arith.addf %34, %24 : vector<8x128xf32>
    %c0_9 = arith.constant 0 : index
    %c0_10 = arith.constant 0 : index
    %c0_11 = arith.constant 0 : index
    %c0_12 = arith.constant 0 : index
    %36 = vector.load %arg4[%c0_9, %c0_10, %c0_11, %c0_12] : memref<1x3x8x128xf32, #tpu.memory_space<vmem>>, vector<1x1x8x128xf32>
    %37 = vector.shape_cast %36 : vector<1x1x8x128xf32> to vector<8x128xf32>
    %38 = vector.shape_cast %35 : vector<8x128xf32> to vector<1x1x8x128xf32>
    tpu.vector_store %arg4[%c0_9, %c0_10, %c0_11, %c0_12], %38 {strides = array<i32>} : memref<1x3x8x128xf32, #tpu.memory_space<vmem>>, vector<1x1x8x128xf32>,
    %c0_13 = arith.constant 0 : index
    %c1 = arith.constant 1 : index
    %c0_14 = arith.constant 0 : index
    %c0_15 = arith.constant 0 : index
    %39 = vector.load %arg4[%c0_13, %c1, %c0_14, %c0_15] : memref<1x3x8x128xf32, #tpu.memory_space<vmem>>, vector<1x1x8x128xf32>
    %40 = vector.shape_cast %39 : vector<1x1x8x128xf32> to vector<8x128xf32>
    %41 = arith.addf %40, %28 : vector<8x128xf32>
    %c0_16 = arith.constant 0 : index
    %c1_17 = arith.constant 1 : index
    %c0_18 = arith.constant 0 : index
    %c0_19 = arith.constant 0 : index
    %42 = vector.load %arg4[%c0_16, %c1_17, %c0_18, %c0_19] : memref<1x3x8x128xf32, #tpu.memory_space<vmem>>, vector<1x1x8x128xf32>
    %43 = vector.shape_cast %42 : vector<1x1x8x128xf32> to vector<8x128xf32>
    %44 = vector.shape_cast %41 : vector<8x128xf32> to vector<1x1x8x128xf32>
    tpu.vector_store %arg4[%c0_16, %c1_17, %c0_18, %c0_19], %44 {strides = array<i32>} : memref<1x3x8x128xf32, #tpu.memory_space<vmem>>, vector<1x1x8x128xf32>,
    %c0_20 = arith.constant 0 : index
    %c2 = arith.constant 2 : index
    %c0_21 = arith.constant 0 : index
    %c0_22 = arith.constant 0 : index
    %45 = vector.load %arg4[%c0_20, %c2, %c0_21, %c0_22] : memref<1x3x8x128xf32, #tpu.memory_space<vmem>>, vector<1x1x8x128xf32>
    %46 = vector.shape_cast %45 : vector<1x1x8x128xf32> to vector<8x128xf32>
    %47 = arith.addf %46, %32 : vector<8x128xf32>
    %c0_23 = arith.constant 0 : index
    %c2_24 = arith.constant 2 : index
    %c0_25 = arith.constant 0 : index
    %c0_26 = arith.constant 0 : index
    %48 = vector.load %arg4[%c0_23, %c2_24, %c0_25, %c0_26] : memref<1x3x8x128xf32, #tpu.memory_space<vmem>>, vector<1x1x8x128xf32>
    %49 = vector.shape_cast %48 : vector<1x1x8x128xf32> to vector<8x128xf32>
    %50 = vector.shape_cast %47 : vector<8x128xf32> to vector<1x1x8x128xf32>
    tpu.vector_store %arg4[%c0_23, %c2_24, %c0_25, %c0_26], %50 {strides = array<i32>} : memref<1x3x8x128xf32, #tpu.memory_space<vmem>>, vector<1x1x8x128xf32>,
    return
  }
  func.func @transform_0(%arg0: i32, %arg1: i32) -> (i32, i32) {
    %c1_i32 = arith.constant 1 : i32
    %0 = arith.muli %arg0, %c1_i32 : i32
    %1 = arith.addi %0, %arg1 : i32
    %c0_i32 = arith.constant 0 : i32
    %c0_i32_0 = arith.constant 0 : i32
    return %1, %c0_i32 : i32, i32
  }
  func.func @transform_1(%arg0: i32, %arg1: i32) -> (i32, i32) {
    %c1_i32 = arith.constant 1 : i32
    %0 = arith.muli %arg0, %c1_i32 : i32
    %1 = arith.addi %0, %arg1 : i32
    %c0_i32 = arith.constant 0 : i32
    %c0_i32_0 = arith.constant 0 : i32
    return %1, %c0_i32 : i32, i32
  }
  func.func @transform_2(%arg0: i32, %arg1: i32) -> (i32, i32, i32, i32) {
    %c0_i32 = arith.constant 0 : i32
    %c0_i32_0 = arith.constant 0 : i32
    %c0_i32_1 = arith.constant 0 : i32
    %c0_i32_2 = arith.constant 0 : i32
    return %arg0, %c0_i32, %c0_i32_0, %c0_i32_1 : i32, i32, i32, i32
  }
}

</mosaic_0001>

<bundles_post_ra>
// kernel: rm_bell_lcosh_loss.1
= control target key start
LH: loop header
LB: loop body
LE: loop exit
PB: predicated region body
PF: predicated region fallthrough
CT: control target
= control target key end

     0   :  { %s190_s0 = inlined_call_operand.vmem [shape: f32[16,128], index: 0, kind: input, shape index: {}]   ;;  %s191_s1 = inlined_call_operand.vmem [shape: f32[16,128], index: 1, kind: input, shape index: {}]   ;;  %s192_s2 = inlined_call_operand.vmem [shape: f32[1,3,8,128], index: 2, kind: output, shape index: {}]  }
   0x1   :  { %v62_v0 = vld [vmem:[%s190_s0] sm:$0xff]  ;;  %v63_v1 = vld [vmem:[%s190_s0 + $0x8] sm:$0xff] }
   0x2   :  { %v64_v2 = vld [vmem:[%s191_s1] sm:$0xff]  ;;  %v65_v3 = vld [vmem:[%s191_s1 + $0x8] sm:$0xff] }
   0x3   :  { %v66_v4 = vsub.f32 %v62_v0, %v64_v2  ;;  %v67_v5 = vsub.f32 %v63_v1, %v65_v3 }
   0x5   :  { %v68_v6 = vmul.f32 %v66_v4, %v66_v4  ;;  %v76_v7 = vand.u32 2147483647, %v66_v4  ;;  %v69_v8 = vmul.f32 %v67_v5, %v67_v5  ;;  %v77_v9 = vand.u32 2147483647, %v67_v5 }
   0x7   :  { %v70_v10 = vmul.f32 -0.0061728396, %v68_v6  ;;  %v78_v11 = vmul.f32 -2.0, %v76_v7  ;;  %v71_v12 = vmul.f32 -0.0061728396, %v69_v8  ;;  %v104_v13 = vadd.f32 %v69_v8, %v68_v6 }
   0x8   :  { %v79_v14 = vmul.f32 -2.0, %v77_v9 }
   0x9   :  { %v72_v15 = vmul.f32 1.442695, %v70_v10  ;;  %v80_v16 = vmul.f32 1.442695, %v78_v11  ;;  %v74_v17 = vmul.f32 1.442695, %v71_v12  ;;  %112 = vst [vmem:[%s192_s2] sm:$0xff] %v104_v13 }
   0xa   :  { %v82_v18 = vmul.f32 1.442695, %v79_v14 }
   0xb   :  { %142 = vpow2.f32 %v72_v15 }
   0xc   :  { %144 = vpow2.f32 %v74_v17 }
   0xd   :  { %146 = vpow2.f32 %v80_v16 }
   0xe   :  { %148 = vpow2.f32 %v82_v18 }
  0x18   :  { %v143_v19 = vpop.eup %142 }
  0x19   :  { %v145_v20 = vpop.eup %144 }
  0x1a   :  { %v147_v21 = vpop.eup %146  ;;  %v106_v22 = vadd.f32 %v145_v20, %v143_v19 }
  0x1b   :  { %v149_v23 = vpop.eup %148  ;;  %v84_v24 = vadd.f32 1.0, %v147_v21  ;;  %v87_v26 = vmul.f32 -0.5, %v147_v21  ;;  %v90_v29 = vand.u32 2147483647, %v147_v21 }
  0x1c   :  { %v93_v25 = vadd.f32 1.0, %v149_v23  ;;  %138 = vst [vmem:[%s192_s2 + $0x8] sm:$0xff] %v106_v22  ;;  %v96_v27 = vmul.f32 -0.5, %v149_v23  ;;  %v99_v31 = vand.u32 2147483647, %v149_v23 }
  0x1d   :  { %150 = vlog2.f32 %v84_v24  ;;  %v88_v28 = vadd.f32 1.0, %v87_v26  ;;  %vm91_vm0 = vcmp.lt.f32.partialorder %v90_v29, 0.0004427343 }
  0x1e   :  { %152 = vlog2.f32 %v93_v25  ;;  %v97_v30 = vadd.f32 1.0, %v96_v27  ;;  %vm100_vm1 = vcmp.lt.f32.partialorder %v99_v31, 0.0004427343 }
  0x1f   :  { %v89_v32 = vmul.f32 %v147_v21, %v88_v28 }
  0x20   :  { %v98_v34 = vmul.f32 %v149_v23, %v97_v30 }
  0x2a   :  { %v151_v33 = vpop.eup %150 }
  0x2b   :  { %v153_v35 = vpop.eup %152  ;;  %v86_v36 = vmul.f32 0.6931472, %v151_v33 }
  0x2c   :  { %v95_v37 = vmul.f32 0.6931472, %v153_v35 }
  0x2d   :  { %v92_v38 = vsel %vm91_vm0, %v89_v32, %v86_v36 }
  0x2e   :  { %v101_v39 = vsel %vm100_vm1, %v98_v34, %v95_v37  ;;  %v102_v40 = vadd.f32 %v92_v38, %v76_v7 }
  0x2f   :  { %v103_v41 = vadd.f32 %v101_v39, %v77_v9 }
  0x31   :  { %v108_v42 = vadd.f32 %v103_v41, %v102_v40 }
  0x33   :  { %140 = vst [vmem:[%s192_s2 + $0x10] sm:$0xff] %v108_v42 }

</bundles_post_ra>
